<compile_context>
chip_gen: v7x
topology: tpu7x:2x2x1
jax: 0.10.0
libtpu: 0.0.40
codegen_flags: <defaults>
</compile_context>

<pallas_src>
import functools

import jax
import jax.numpy as jnp
from jax.experimental import pallas as pl
from jax.experimental.pallas import tpu as pltpu

HIDDEN = 128                       # fixed by the module: nn.Linear(inbits, 128)
TK_CAP = 4096                      # max K tile (multiple of 128)
MAX_RESIDENT_M = 512               # largest padded batch kept fully VMEM-resident
VMEM_LIMIT_BYTES = 32 * 1024 * 1024  # explicit scoped-VMEM limit, safe on v5e/v6e/v7x


def _round_up(x, m):
    return (x + m - 1) // m * m


def _cdiv(a, b):
    return -(-a // b)


def _k_tiling(inbits):
    """Deterministic K tiling: (tk, padded_K, n_k_steps).

    Shared by parameter init (weight zero-padding) and the forward pass so the
    chosen tk always divides padded K exactly.  Padding waste is < 128 rows per
    K step (zeros, numerically inert).
    """
    k128 = _round_up(max(int(inbits), 1), 128)
    nk = _cdiv(k128, TK_CAP)
    tk = _round_up(_cdiv(k128, nk), 128)
    return tk, nk * tk, nk


# ---------------- fused MLP-head kernel ----------------

def _make_mlp_kernel(k_axis):
    """Kernel factory; k_axis is the grid axis that carries the fc1 K reduction."""

    def kernel(x_ref, w1_ref, b1_ref, w2_ref, b2_ref, o_ref, h_acc):
        k = pl.program_id(k_axis)

        @pl.when(k == 0)
        def _():
            h_acc[...] = jnp.zeros_like(h_acc)

        # fc1 partial product: (tm, tk) @ (tk, 128).  Per-tile bf16 cast of x,
        # bf16 weights, f32 MXU accumulation.
        h_acc[...] += jnp.dot(x_ref[...].astype(w1_ref.dtype), w1_ref[...],
                              preferred_element_type=jnp.float32)

        @pl.when(k == pl.num_programs(k_axis) - 1)
        def _():
            # Epilogue on the resident accumulator: bias + ReLU, then the small
            # fc2 matmul (weights resident in VMEM), bias, store lane-dense f32.
            h = jnp.maximum(h_acc[...] + b1_ref[...], 0.0)
            out = jnp.dot(h.astype(w2_ref.dtype), w2_ref[...],
                          preferred_element_type=jnp.float32) + b2_ref[...]
            o_ref[...] = out.astype(o_ref.dtype)

    return kernel


def mlp_projection(feats, params, outbits):
    """feats: (B, inbits) backbone features -> (B, outbits) f32."""
    B, K = feats.shape
    w1, b1, w2, b2 = params["w1"], params["b1"], params["w2"], params["b2"]
    Kp, H = w1.shape
    H2, N2p = w2.shape
    tk, Kp_expect, nk = _k_tiling(K)
    assert H == HIDDEN and H2 == HIDDEN and Kp == Kp_expect, \
        "params were initialised for a different inbits"

    resident_m = B <= MAX_RESIDENT_M
    if resident_m:
        # Whole (padded) batch resident in the VMEM accumulator; grid runs over
        # K only -> W1 is streamed from HBM exactly once per call.
        tm = _round_up(B, 16)
        nm = 1
    else:
        # Large batch fallback: (M, K) tiling, tm=256.
        # TODO(synk): K-outer grid variant that keeps W1 read-once for huge B.
        tm = 256
        nm = _cdiv(B, tm)
    Mp = nm * tm

    # Keep x in its input dtype (cast per-tile in-kernel); pad only if needed.
    x = feats
    if (Mp, Kp) != (B, K):
        x = jnp.pad(x, ((0, Mp - B), (0, Kp - K)))

    if resident_m:
        kernel = _make_mlp_kernel(k_axis=0)
        grid = (nk,)
        in_specs = [
            pl.BlockSpec((tm, tk), lambda k: (0, k)),          # x K-slab
            pl.BlockSpec((tk, HIDDEN), lambda k: (k, 0)),      # fc1 weight tile
            pl.BlockSpec((1, HIDDEN), lambda k: (0, 0)),       # fc1 bias (resident)
            pl.BlockSpec((HIDDEN, N2p), lambda k: (0, 0)),     # fc2 weight (resident)
            pl.BlockSpec((1, N2p), lambda k: (0, 0)),          # fc2 bias (resident)
        ]
        out_specs = pl.BlockSpec((tm, N2p), lambda k: (0, 0))
        dims = ("arbitrary",)
    else:
        kernel = _make_mlp_kernel(k_axis=1)
        grid = (nm, nk)
        in_specs = [
            pl.BlockSpec((tm, tk), lambda i, k: (i, k)),
            pl.BlockSpec((tk, HIDDEN), lambda i, k: (k, 0)),
            pl.BlockSpec((1, HIDDEN), lambda i, k: (0, 0)),
            pl.BlockSpec((HIDDEN, N2p), lambda i, k: (0, 0)),
            pl.BlockSpec((1, N2p), lambda i, k: (0, 0)),
        ]
        out_specs = pl.BlockSpec((tm, N2p), lambda i, k: (i, 0))
        dims = ("parallel", "arbitrary")

    out = pl.pallas_call(
        kernel,
        out_shape=jax.ShapeDtypeStruct((Mp, N2p), jnp.float32),
        grid_spec=pltpu.PrefetchScalarGridSpec(
            num_scalar_prefetch=0,
            grid=grid,
            in_specs=in_specs,
            out_specs=out_specs,
            scratch_shapes=[pltpu.VMEM((tm, HIDDEN), jnp.float32)],
        ),
        compiler_params=pltpu.CompilerParams(
            dimension_semantics=dims,
            vmem_limit_bytes=VMEM_LIMIT_BYTES),
    )(x, w1, b1, w2, b2)
    return out[:B, :outbits]


# ---------------- backbone + forward ----------------

def backbone_stub(x):
    # TODO(synk): `backbonemodel` is an external module passed into MLPProjection
    # whose source is not provided; a flatten stand-in (features = x.view(B, -1))
    # is used so that the projection head receives (B, inbits) features.
    return x.reshape(x.shape[0], -1)


def mlp_projection_forward(x, params, *, outbits):
    feats = backbone_stub(x)
    return mlp_projection(feats, params, outbits)


# ---------------- deterministic parameter init (PyTorch nn.Linear-style) ----------------

def init_mlp_projection_params(key, inbits, outbits):
    k1, k2, k3, k4 = jax.random.split(key, 4)

    def linear(kw, kb, in_f, out_f):
        bound = 1.0 / float(in_f) ** 0.5
        w = jax.random.uniform(kw, (out_f, in_f), jnp.float32, -bound, bound)
        b = jax.random.uniform(kb, (out_f,), jnp.float32, -bound, bound)
        return w, b

    w1, b1 = linear(k1, k2, inbits, HIDDEN)     # PyTorch layout (out_f, in_f)
    w2, b2 = linear(k3, k4, HIDDEN, outbits)

    _, Kp, _ = _k_tiling(inbits)                # padded K is an exact multiple of tk
    N2p = _round_up(outbits, 128)

    # Pre-transpose to (K, N), zero-pad to tile-aligned shapes, store weights bf16.
    # NOTE: bf16 weight storage changes numerics slightly vs. pure f32 PyTorch
    # (accumulation stays f32 on the MXU).
    w1_t = jnp.zeros((Kp, HIDDEN), jnp.bfloat16).at[:inbits, :].set(
        w1.T.astype(jnp.bfloat16))
    w2_t = jnp.zeros((HIDDEN, N2p), jnp.bfloat16).at[:, :outbits].set(
        w2.T.astype(jnp.bfloat16))
    b1_p = b1.reshape(1, HIDDEN).astype(jnp.float32)
    b2_p = jnp.zeros((1, N2p), jnp.float32).at[0, :outbits].set(b2)

    return {"w1": w1_t, "b1": b1_p, "w2": w2_t, "b2": b2_p}


# ---------------- pure-JAX reference (same bf16 numerics path) ----------------

def mlp_projection_ref(feats, params, outbits):
    x = feats.astype(jnp.bfloat16).astype(jnp.float32)
    K = feats.shape[1]
    w1 = params["w1"].astype(jnp.float32)[:K, :]
    h = jnp.maximum(x @ w1 + params["b1"], 0.0)
    h = h.astype(jnp.bfloat16).astype(jnp.float32)
    w2 = params["w2"].astype(jnp.float32)
    out = h @ w2 + params["b2"]
    return out[:, :outbits]


if __name__ == "__main__":
    key = jax.random.PRNGKey(0)
    kx, kp = jax.random.split(key)

    B, C, HH, WW = 2, 4, 16, 16
    INBITS = C * HH * WW        # 1024 features from the (flatten) backbone stand-in
    OUTBITS = 64

    x = jax.random.normal(kx, (B, C, HH, WW), jnp.float32)
    params = init_mlp_projection_params(kp, INBITS, OUTBITS)

    fwd = jax.jit(functools.partial(mlp_projection_forward, outbits=OUTBITS))
    out = fwd(x, params)
    jax.block_until_ready(out)

    assert out.shape == (B, OUTBITS), out.shape
    assert out.dtype == jnp.float32

    ref = mlp_projection_ref(backbone_stub(x), params, OUTBITS)
    max_err = float(jnp.max(jnp.abs(out - ref)))
    assert jnp.allclose(out, ref, rtol=2e-2, atol=2e-2), max_err

    print("KERNEL_OK")
</pallas_src>

<mosaic_0001>
module attributes {stable_mosaic.version = 11 : i64} {
  func.func @kernel(%arg0: i32, %arg1: memref<16x1024xf32, #tpu.memory_space<vmem>>, %arg2: memref<1024x128xbf16, #tpu.memory_space<vmem>>, %arg3: memref<1x128xf32, #tpu.memory_space<vmem>>, %arg4: memref<128x128xbf16, #tpu.memory_space<vmem>>, %arg5: memref<1x128xf32, #tpu.memory_space<vmem>>, %arg6: memref<16x128xf32, #tpu.memory_space<vmem>>, %arg7: memref<16x128xf32, #tpu.memory_space<vmem>>) attributes {dimension_semantics = [#tpu.dimension_semantics<arbitrary>], iteration_bounds = array<i64: 1>, scalar_prefetch = 0 : i64, scratch_operands = 1 : i64, tpu.core_type = #tpu.core_type<tc>, window_params = [{transform_indices = @transform_0, window_bounds = array<i64: 16, 1024>}, {transform_indices = @transform_1, window_bounds = array<i64: 1024, 128>}, {pipeline_mode = #tpu.pipeline_mode<synchronous>, transform_indices = @transform_2, window_bounds = array<i64: 1, 128>}, {pipeline_mode = #tpu.pipeline_mode<synchronous>, transform_indices = @transform_3, window_bounds = array<i64: 128, 128>}, {pipeline_mode = #tpu.pipeline_mode<synchronous>, transform_indices = @transform_4, window_bounds = array<i64: 1, 128>}, {pipeline_mode = #tpu.pipeline_mode<synchronous>, transform_indices = @transform_5, window_bounds = array<i64: 16, 128>}]} {
    %c0_i32 = arith.constant 0 : i32
    %0 = arith.cmpi eq, %arg0, %c0_i32 : i32
    %1 = arith.extui %0 : i1 to i32
    %c0_i32_0 = arith.constant 0 : i32
    %2 = arith.cmpi ne, %1, %c0_i32_0 : i32
    scf.if %2 {
      %cst_10 = arith.constant 0.000000e+00 : f32
      %13 = vector.broadcast %cst_10 : f32 to vector<16x128xf32>
      %c0_11 = arith.constant 0 : index
      %c0_12 = arith.constant 0 : index
      %14 = vector.load %arg7[%c0_11, %c0_12] : memref<16x128xf32, #tpu.memory_space<vmem>>, vector<16x128xf32>
      tpu.vector_store %arg7[%c0_11, %c0_12], %13 {strides = array<i32>} : memref<16x128xf32, #tpu.memory_space<vmem>>, vector<16x128xf32>,
    } else {
    }
    %c0 = arith.constant 0 : index
    %c0_1 = arith.constant 0 : index
    %3 = vector.load %arg7[%c0, %c0_1] : memref<16x128xf32, #tpu.memory_space<vmem>>, vector<16x128xf32>
    %c0_2 = arith.constant 0 : index
    %c0_3 = arith.constant 0 : index
    %4 = vector.load %arg1[%c0_2, %c0_3] : memref<16x1024xf32, #tpu.memory_space<vmem>>, vector<16x1024xf32>
    %5 = arith.truncf %4 : vector<16x1024xf32> to vector<16x1024xbf16>
    %c0_4 = arith.constant 0 : index
    %c0_5 = arith.constant 0 : index
    %6 = vector.load %arg2[%c0_4, %c0_5] : memref<1024x128xbf16, #tpu.memory_space<vmem>>, vector<1024x128xbf16>
    %cst = arith.constant dense<0.000000e+00> : vector<16x128xf32>
    %7 = tpu.matmul %5, %6, %cst {dimension_numbers = #tpu.dot_dimension_numbers<[1], [0], [0], [1], [0, 0, 1, 1], [], []>} : vector<16x1024xbf16>, vector<1024x128xbf16>, vector<16x128xf32> -> vector<16x128xf32>
    %8 = arith.addf %3, %7 : vector<16x128xf32>
    %c0_6 = arith.constant 0 : index
    %c0_7 = arith.constant 0 : index
    %9 = vector.load %arg7[%c0_6, %c0_7] : memref<16x128xf32, #tpu.memory_space<vmem>>, vector<16x128xf32>
    tpu.vector_store %arg7[%c0_6, %c0_7], %8 {strides = array<i32>} : memref<16x128xf32, #tpu.memory_space<vmem>>, vector<16x128xf32>,
    %c0_i32_8 = arith.constant 0 : i32
    %10 = arith.cmpi eq, %arg0, %c0_i32_8 : i32
    %11 = arith.extui %10 : i1 to i32
    %c0_i32_9 = arith.constant 0 : i32
    %12 = arith.cmpi ne, %11, %c0_i32_9 : i32
    scf.if %12 {
      %c0_10 = arith.constant 0 : index
      %c0_11 = arith.constant 0 : index
      %13 = vector.load %arg7[%c0_10, %c0_11] : memref<16x128xf32, #tpu.memory_space<vmem>>, vector<16x128xf32>
      %c0_12 = arith.constant 0 : index
      %c0_13 = arith.constant 0 : index
      %14 = vector.load %arg3[%c0_12, %c0_13] : memref<1x128xf32, #tpu.memory_space<vmem>>, vector<1x128xf32>
      %15 = vector.broadcast %14 : vector<1x128xf32> to vector<16x128xf32>
      %16 = arith.addf %13, %15 : vector<16x128xf32>
      %cst_14 = arith.constant 0.000000e+00 : f32
      %17 = vector.broadcast %cst_14 : f32 to vector<16x128xf32>
      %18 = arith.maximumf %16, %17 : vector<16x128xf32>
      %19 = arith.truncf %18 : vector<16x128xf32> to vector<16x128xbf16>
      %c0_15 = arith.constant 0 : index
      %c0_16 = arith.constant 0 : index
      %20 = vector.load %arg4[%c0_15, %c0_16] : memref<128x128xbf16, #tpu.memory_space<vmem>>, vector<128x128xbf16>
      %cst_17 = arith.constant dense<0.000000e+00> : vector<16x128xf32>
      %21 = tpu.matmul %19, %20, %cst_17 {dimension_numbers = #tpu.dot_dimension_numbers<[1], [0], [0], [1], [0, 0, 1, 1], [], []>} : vector<16x128xbf16>, vector<128x128xbf16>, vector<16x128xf32> -> vector<16x128xf32>
      %c0_18 = arith.constant 0 : index
      %c0_19 = arith.constant 0 : index
      %22 = vector.load %arg5[%c0_18, %c0_19] : memref<1x128xf32, #tpu.memory_space<vmem>>, vector<1x128xf32>
      %23 = vector.broadcast %22 : vector<1x128xf32> to vector<16x128xf32>
      %24 = arith.addf %21, %23 : vector<16x128xf32>
      %c0_20 = arith.constant 0 : index
      %c0_21 = arith.constant 0 : index
      %25 = vector.load %arg6[%c0_20, %c0_21] : memref<16x128xf32, #tpu.memory_space<vmem>>, vector<16x128xf32>
      tpu.vector_store %arg6[%c0_20, %c0_21], %24 {strides = array<i32>} : memref<16x128xf32, #tpu.memory_space<vmem>>, vector<16x128xf32>,
    } else {
    }
    return
  }
  func.func @transform_0(%arg0: i32) -> (i32, i32) {
    %c0_i32 = arith.constant 0 : i32
    %c0_i32_0 = arith.constant 0 : i32
    return %c0_i32, %arg0 : i32, i32
  }
  func.func @transform_1(%arg0: i32) -> (i32, i32) {
    %c0_i32 = arith.constant 0 : i32
    %c0_i32_0 = arith.constant 0 : i32
    return %arg0, %c0_i32 : i32, i32
  }
  func.func @transform_2(%arg0: i32) -> (i32, i32) {
    %c0_i32 = arith.constant 0 : i32
    %c0_i32_0 = arith.constant 0 : i32
    %c0_i32_1 = arith.constant 0 : i32
    return %c0_i32, %c0_i32_0 : i32, i32
  }
  func.func @transform_3(%arg0: i32) -> (i32, i32) {
    %c0_i32 = arith.constant 0 : i32
    %c0_i32_0 = arith.constant 0 : i32
    %c0_i32_1 = arith.constant 0 : i32
    return %c0_i32, %c0_i32_0 : i32, i32
  }
  func.func @transform_4(%arg0: i32) -> (i32, i32) {
    %c0_i32 = arith.constant 0 : i32
    %c0_i32_0 = arith.constant 0 : i32
    %c0_i32_1 = arith.constant 0 : i32
    return %c0_i32, %c0_i32_0 : i32, i32
  }
  func.func @transform_5(%arg0: i32) -> (i32, i32) {
    %c0_i32 = arith.constant 0 : i32
    %c0_i32_0 = arith.constant 0 : i32
    %c0_i32_1 = arith.constant 0 : i32
    return %c0_i32, %c0_i32_0 : i32, i32
  }
}

</mosaic_0001>

<bundles_post_ra>
// kernel: mlp_projection_forward.1
= control target key start
LH: loop header
LB: loop body
LE: loop exit
PB: predicated region body
PF: predicated region fallthrough
CT: control target
= control target key end

     0   :  { %10 = vsyncpa [#allocation4], 0  ;;  %s1175_s18 = smov [#allocation3]   ;;  %s1306_s0 = inlined_call_operand.vmem [shape: f32[16,1024], index: 0, kind: input, shape index: {}]   ;;  %s1307_s1 = inlined_call_operand.hbm [shape: bf16[1024,128], index: 1, kind: input, shape index: {}]   ;;  %s1308_s2 = inlined_call_operand.vmem [shape: f32[1,128], index: 2, kind: input, shape index: {}]   ;;  %s1309_s3 = inlined_call_operand.vmem [shape: bf16[128,128], index: 3, kind: input, shape index: {}]   ;;  %s1310_s4 = inlined_call_operand.vmem [shape: f32[1,128], index: 4, kind: input, shape index: {}]   ;;  %s1311_s5 = inlined_call_operand.vmem [shape: f32[16,128], index: 5, kind: output, shape index: {}]  }
   0x1   :  { %s18_s19 = sshll.u32 %s1175_s18, 4  ;;  %s1151_s22 = scalar_lea.hbm %s1307_s1, 8192  ;;  %s19_s19 = int_to_ptr.vmem [resolvable:$true] %s18_s19 }
   0x2   :  { %p1152_p0 = scmp.ne.s32.totalorder %s1307_s1, %s1151_s22  ;;  %p1155_p1 = scmp.lt.u32.totalorder %s1151_s22, %s1307_s1 }
   0x4   :  { %p1157_p2 = pnand %p1155_p1, %p1152_p0 }
   0x6   :  { %1160 = shalt.err (!%p1157_p2)
}
   0x7   :  { %s1161_s27 = scalar_lea.vmem %s19_s19, 8192  ;;  %p1166_p4 = scmp.lt.s32.totalorder %s19_s19, %s19_s19 }
   0x8   :  { %p1162_p3 = scmp.ne.s32.totalorder %s19_s19, %s1161_s27  ;;  %p1167_p5 = scmp.lt.s32.totalorder %s1161_s27, %s1161_s27 }
   0xa   :  { %p1168_p6 = por %p1167_p5, %p1166_p4 }
   0xc   :  { %p1169_p7 = pnand %p1168_p6, %p1162_p3 }
   0xe   :  { %1172 = shalt.err (!%p1169_p7)
}
   0xf   :  { %s1176_s28 = smov 64   ;;  %s1177_s29 = smov 4  }
  0x10   :  { %24 = dma.hbm_to_vmem [thread:$0]  %s1307_s1, 8192, %s19_s19, [#allocation4], %s1176_s28, %s1176_s28, %s1177_s29  }
  0x11   :  { %1173 = dma.done.wait [#allocation4], 8192  }
  0x12   :  { %1174 = vsyncadd [#allocation4], 4294959104  ;;  %v1079_v0 = vld [vmem:[#allocation3 + $0x40] sm:$0xff]   ;;  %v1083_v4 = vld [vmem:[#allocation3 + $0x48] sm:$0xff]   ;;  %vm1179_vm0 = vmmov 0  }
  0x13   :  { %v1080_v1 = vld [vmem:[#allocation3 + $0xc0] sm:$0xff]   ;;  %957 = vmatprep.subr.bf16.mxu0 %v1079_v0  ;;  %v1084_v5 = vld [vmem:[#allocation3 + $0xc8] sm:$0xff]   ;;  %v1087_v8 = vld [vmem:[#allocation3 + $0x50] sm:$0xff]  }
  0x14   :  { %v1081_v2 = vld [vmem:[#allocation3] sm:$0xff]   ;;  %979 = vmatprep.subr.bf16.mxu1 %v1080_v1  ;;  %v1085_v6 = vld [vmem:[#allocation3 + $0x8] sm:$0xff]   ;;  %v1088_v9 = vld [vmem:[#allocation3 + $0xd0] sm:$0xff]  }
  0x15   :  { %v1082_v3 = vld [vmem:[#allocation3 + $0x80] sm:$0xff]   ;;  %958 = vmatpush3.bf16.msra.mxu0 %v1081_v2  ;;  %v1086_v7 = vld [vmem:[#allocation3 + $0x88] sm:$0xff]   ;;  %v1089_v10 = vld [vmem:[#allocation3 + $0x10] sm:$0xff]  }
  0x16   :  { %980 = vmatpush3.bf16.msra.mxu1 %v1082_v3  ;;  %959 = vmatprep.subr.bf16.mxu0 %v1083_v4  ;;  %v1090_v11 = vld [vmem:[#allocation3 + $0x90] sm:$0xff]   ;;  %v1091_v12 = vld [vmem:[#allocation3 + $0x58] sm:$0xff]   ;;  %v1095_v16 = vld [vmem:[#allocation3 + $0x60] sm:$0xff]  }
  0x17   :  { %981 = vmatprep.subr.bf16.mxu1 %v1084_v5  ;;  %v1092_v13 = vld [vmem:[#allocation3 + $0xd8] sm:$0xff]   ;;  %v1096_v17 = vld [vmem:[#allocation3 + $0xe0] sm:$0xff]   ;;  %v1099_v20 = vld [vmem:[#allocation3 + $0x68] sm:$0xff]  }
  0x18   :  { %v1093_v14 = vld [vmem:[#allocation3 + $0x18] sm:$0xff]   ;;  %v1097_v18 = vld [vmem:[#allocation3 + $0x20] sm:$0xff]   ;;  %v1100_v21 = vld [vmem:[#allocation3 + $0xe8] sm:$0xff]  }
  0x19   :  { %960 = vmatpush3.bf16.msra.mxu0 %v1085_v6  ;;  %v1094_v15 = vld [vmem:[#allocation3 + $0x98] sm:$0xff]   ;;  %v1098_v19 = vld [vmem:[#allocation3 + $0xa0] sm:$0xff]   ;;  %v1101_v22 = vld [vmem:[#allocation3 + $0x28] sm:$0xff]  }
  0x1a   :  { %982 = vmatpush3.bf16.msra.mxu1 %v1086_v7  ;;  %961 = vmatprep.subr.bf16.mxu0 %v1087_v8  ;;  %v1102_v23 = vld [vmem:[#allocation3 + $0xa8] sm:$0xff]   ;;  %v1103_v24 = vld [vmem:[#allocation3 + $0x70] sm:$0xff]   ;;  %v1107_v28 = vld [vmem:[#allocation3 + $0x78] sm:$0xff]  }
  0x1b   :  { %983 = vmatprep.subr.bf16.mxu1 %v1088_v9  ;;  %v1104_v25 = vld [vmem:[#allocation3 + $0xf0] sm:$0xff]   ;;  %v1108_v29 = vld [vmem:[#allocation3 + $0xf8] sm:$0xff]   ;;  %v44_v32 = vld [vmem:[%s1306_s0 + $0x8] sm:$0xff] }
  0x1c   :  { %v1105_v26 = vld [vmem:[#allocation3 + $0x30] sm:$0xff]   ;;  %v1109_v30 = vld [vmem:[#allocation3 + $0x38] sm:$0xff]   ;;  %v52_v33 = vld [vmem:[%s1306_s0 + $0x48] sm:$0xff] }
  0x1d   :  { %962 = vmatpush3.bf16.msra.mxu0 %v1089_v10  ;;  %v1106_v27 = vld [vmem:[#allocation3 + $0xb0] sm:$0xff]   ;;  %v1110_v31 = vld [vmem:[#allocation3 + $0xb8] sm:$0xff]   ;;  %v60_v35 = vpack.c.bf16 %v52_v33, %v44_v32  ;;  %v43_v37 = vld [vmem:[%s1306_s0] sm:$0xff] }
  0x1e   :  { %984 = vmatpush3.bf16.msra.mxu1 %v1090_v11  ;;  %963 = vmatprep.subr.bf16.mxu0 %v1091_v12  ;;  %v46_v34 = vld [vmem:[%s1306_s0 + $0x18] sm:$0xff]  ;;  %v51_v38 = vld [vmem:[%s1306_s0 + $0x40] sm:$0xff]  ;;  %v45_v41 = vld [vmem:[%s1306_s0 + $0x10] sm:$0xff] }
  0x1f   :  { %985 = vmatprep.subr.bf16.mxu1 %v1092_v13  ;;  %v54_v36 = vld [vmem:[%s1306_s0 + $0x58] sm:$0xff]  ;;  %v59_v40 = vpack.c.bf16 %v51_v38, %v43_v37  ;;  %v53_v42 = vld [vmem:[%s1306_s0 + $0x50] sm:$0xff]  ;;  %611 = vmatprep.mubr.bf16.mxu0 %v60_v35  ;;  %v1111_v44 = vld [vmem:[#allocation3 + $0x140] sm:$0xff]  }
  0x20   :  { %v62_v39 = vpack.c.bf16 %v54_v36, %v46_v34  ;;  %v61_v43 = vpack.c.bf16 %v53_v42, %v45_v41  ;;  %v1112_v45 = vld [vmem:[#allocation3 + $0x1c0] sm:$0xff]   ;;  %v1115_v48 = vld [vmem:[#allocation3 + $0x148] sm:$0xff]   ;;  %v1119_v52 = vld [vmem:[#allocation3 + $0x150] sm:$0xff]  }
  0x21   :  { %964 = vmatpush3.bf16.msra.mxu0 %v1093_v14  ;;  %v1113_v46 = vld [vmem:[#allocation3 + $0x100] sm:$0xff]   ;;  %v1116_v49 = vld [vmem:[#allocation3 + $0x1c8] sm:$0xff]   ;;  %v1120_v53 = vld [vmem:[#allocation3 + $0x1d0] sm:$0xff]  }
  0x22   :  { %986 = vmatpush3.bf16.msra.mxu1 %v1094_v15  ;;  %965 = vmatprep.subr.bf16.mxu0 %v1095_v16  ;;  %v1114_v47 = vld [vmem:[#allocation3 + $0x180] sm:$0xff]   ;;  %v1117_v50 = vld [vmem:[#allocation3 + $0x108] sm:$0xff]   ;;  %v1121_v54 = vld [vmem:[#allocation3 + $0x110] sm:$0xff]  }
  0x23   :  { %987 = vmatprep.subr.bf16.mxu1 %v1096_v17  ;;  %652 = vmatprep.mubr.bf16.mxu1 %v62_v39  ;;  %v1118_v51 = vld [vmem:[#allocation3 + $0x188] sm:$0xff]   ;;  %v1122_v55 = vld [vmem:[#allocation3 + $0x190] sm:$0xff]   ;;  %v1123_v56 = vld [vmem:[#allocation3 + $0x158] sm:$0xff]  }
  0x24   :  { %v1124_v57 = vld [vmem:[#allocation3 + $0x1d8] sm:$0xff]   ;;  %v1127_v60 = vld [vmem:[#allocation3 + $0x160] sm:$0xff]   ;;  %v1131_v0 = vld [vmem:[#allocation3 + $0x168] sm:$0xff]  }
  0x25   :  { %966 = vmatpush3.bf16.msra.mxu0 %v1097_v18  ;;  %v1125_v58 = vld [vmem:[#allocation3 + $0x118] sm:$0xff]   ;;  %v1128_v61 = vld [vmem:[#allocation3 + $0x1e0] sm:$0xff]   ;;  %v1132_v1 = vld [vmem:[#allocation3 + $0x1e8] sm:$0xff]  }
  0x26   :  { %988 = vmatpush3.bf16.msra.mxu1 %v1098_v19  ;;  %967 = vmatprep.subr.bf16.mxu0 %v1099_v20  ;;  %v1126_v59 = vld [vmem:[#allocation3 + $0x198] sm:$0xff]   ;;  %v1129_v62 = vld [vmem:[#allocation3 + $0x120] sm:$0xff]   ;;  %v1133_v2 = vld [vmem:[#allocation3 + $0x128] sm:$0xff]  }
  0x27   :  { %989 = vmatprep.subr.bf16.mxu1 %v1100_v21  ;;  %v1130_v63 = vld [vmem:[#allocation3 + $0x1a0] sm:$0xff]   ;;  %v1134_v3 = vld [vmem:[#allocation3 + $0x1a8] sm:$0xff]   ;;  %v1135_v4 = vld [vmem:[#allocation3 + $0x170] sm:$0xff]  }
  0x28   :  { %v1136_v5 = vld [vmem:[#allocation3 + $0x1f0] sm:$0xff]   ;;  %v1139_v8 = vld [vmem:[#allocation3 + $0x178] sm:$0xff]   ;;  %v48_v12 = vld [vmem:[%s1306_s0 + $0x28] sm:$0xff] }
  0x29   :  { %968 = vmatpush3.bf16.msra.mxu0 %v1101_v22  ;;  %v1137_v6 = vld [vmem:[#allocation3 + $0x130] sm:$0xff]   ;;  %v1140_v9 = vld [vmem:[#allocation3 + $0x1f8] sm:$0xff]   ;;  %v56_v13 = vld [vmem:[%s1306_s0 + $0x68] sm:$0xff] }
  0x2a   :  { %990 = vmatpush3.bf16.msra.mxu1 %v1102_v23  ;;  %969 = vmatprep.subr.bf16.mxu0 %v1103_v24  ;;  %v1138_v7 = vld [vmem:[#allocation3 + $0x1b0] sm:$0xff]   ;;  %v1141_v10 = vld [vmem:[#allocation3 + $0x138] sm:$0xff]   ;;  %v64_v16 = vpack.c.bf16 %v56_v13, %v48_v12  ;;  %v47_v18 = vld [vmem:[%s1306_s0 + $0x20] sm:$0xff] }
  0x2b   :  { %991 = vmatprep.subr.bf16.mxu1 %v1104_v25  ;;  %v1142_v11 = vld [vmem:[#allocation3 + $0x1b8] sm:$0xff]   ;;  %v55_v19 = vld [vmem:[%s1306_s0 + $0x60] sm:$0xff]  ;;  %v49_v20 = vld [vmem:[%s1306_s0 + $0x30] sm:$0xff]  ;;  %v1178_v25 = vmov 0.0  }
  0x2c   :  { %v50_v14 = vld [vmem:[%s1306_s0 + $0x38] sm:$0xff]  ;;  %v63_v21 = vpack.c.bf16 %v55_v19, %v47_v18  ;;  %v57_v22 = vld [vmem:[%s1306_s0 + $0x70] sm:$0xff]  ;;  %v1143_v24 = vld [vmem:[%s1309_s3] sm:$0xff]  }
  0x2d   :  { %970 = vmatpush3.bf16.msra.mxu0 %v1105_v26  ;;  %v58_v15 = vld [vmem:[%s1306_s0 + $0x78] sm:$0xff]  ;;  %v65_v23 = vpack.c.bf16 %v57_v22, %v49_v20  ;;  %v1144_v26 = vld [vmem:[%s1309_s3 + $0x8] sm:$0xff]  }
  0x2e   :  { %992 = vmatpush3.bf16.msra.mxu1 %v1106_v27  ;;  %971 = vmatprep.subr.bf16.mxu0 %v1107_v28  ;;  %v66_v17 = vpack.c.bf16 %v58_v15, %v50_v14  ;;  %v1145_v27 = vld [vmem:[%s1309_s3 + $0x10] sm:$0xff]   ;;  %v1146_v28 = vld [vmem:[%s1309_s3 + $0x18] sm:$0xff]  }
  0x2f   :  { %993 = vmatprep.subr.bf16.mxu1 %v1108_v29  ;;  %v1147_v29 = vld [vmem:[%s1309_s3 + $0x20] sm:$0xff]   ;;  %v1150_v32 = vld [vmem:[%s1309_s3 + $0x38] sm:$0xff]  }
  0x31   :  { %972 = vmatpush3.bf16.msra.mxu0 %v1109_v30  ;;  %v1148_v30 = vld [vmem:[%s1309_s3 + $0x28] sm:$0xff]  }
  0x32   :  { %994 = vmatpush3.bf16.msra.mxu1 %v1110_v31  ;;  %1001 = vmatprep.subr.bf16.mxu0 %v1111_v44  ;;  %v1149_v31 = vld [vmem:[%s1309_s3 + $0x30] sm:$0xff]  }
  0x33   :  { %1023 = vmatprep.subr.bf16.mxu1 %v1112_v45 }
  0x34   :  { %612 = vmatmul.mubr.bf16.vlgmr.msra.gmra.mrb[0].mxu0 %v59_v40 }
  0x35   :  { %653 = vmatmul.mubr.bf16.vlgmr.msra.gmra.mrb[0].mxu1 %v61_v43  ;;  %1002 = vmatpush3.bf16.msra.mxu0 %v1113_v46 }
  0x36   :  { %1024 = vmatpush3.bf16.msra.mxu1 %v1114_v47  ;;  %1003 = vmatprep.subr.bf16.mxu0 %v1115_v48 }
  0x37   :  { %1025 = vmatprep.subr.bf16.mxu1 %v1116_v49  ;;  %693 = vmatprep.mubr.bf16.mxu0 %v64_v16 }
  0x38   :  { %734 = vmatprep.mubr.bf16.mxu1 %v66_v17 }
  0x39   :  { %1004 = vmatpush3.bf16.msra.mxu0 %v1117_v50 }
  0x3a   :  { %1026 = vmatpush3.bf16.msra.mxu1 %v1118_v51  ;;  %1005 = vmatprep.subr.bf16.mxu0 %v1119_v52 }
  0x3b   :  { %1027 = vmatprep.subr.bf16.mxu1 %v1120_v53 }
  0x3d   :  { %1006 = vmatpush3.bf16.msra.mxu0 %v1121_v54 }
  0x3e   :  { %1028 = vmatpush3.bf16.msra.mxu1 %v1122_v55  ;;  %1007 = vmatprep.subr.bf16.mxu0 %v1123_v56 }
  0x3f   :  { %1029 = vmatprep.subr.bf16.mxu1 %v1124_v57 }
  0x41   :  { %1008 = vmatpush3.bf16.msra.mxu0 %v1125_v58 }
  0x42   :  { %1030 = vmatpush3.bf16.msra.mxu1 %v1126_v59  ;;  %1009 = vmatprep.subr.bf16.mxu0 %v1127_v60  ;;  %v947_v59 = vld [vmem:[%s1308_s2] ss:$0 sm:$0xff] }
  0x43   :  { %1031 = vmatprep.subr.bf16.mxu1 %v1128_v61 }
  0x45   :  { %1010 = vmatpush3.bf16.msra.mxu0 %v1129_v62 }
  0x46   :  { %1032 = vmatpush3.bf16.msra.mxu1 %v1130_v63  ;;  %1011 = vmatprep.subr.bf16.mxu0 %v1131_v0 }
  0x47   :  { %1033 = vmatprep.subr.bf16.mxu1 %v1132_v1 }
  0x49   :  { %1012 = vmatpush3.bf16.msra.mxu0 %v1133_v2 }
  0x4a   :  { %1034 = vmatpush3.bf16.msra.mxu1 %v1134_v3  ;;  %1013 = vmatprep.subr.bf16.mxu0 %v1135_v4 }
  0x4b   :  { %1035 = vmatprep.subr.bf16.mxu1 %v1136_v5  ;;  %v948_v5 = vld [vmem:[%s1310_s4] ss:$0 sm:$0xff] }
  0x4d   :  { %1014 = vmatpush3.bf16.msra.mxu0 %v1137_v6 }
  0x4e   :  { %1036 = vmatpush3.bf16.msra.mxu1 %v1138_v7  ;;  %1015 = vmatprep.subr.bf16.mxu0 %v1139_v8 }
  0x4f   :  { %1037 = vmatprep.subr.bf16.mxu1 %v1140_v9 }
  0x51   :  { %1016 = vmatpush3.bf16.msra.mxu0 %v1141_v10 }
  0x52   :  { %1038 = vmatpush3.bf16.msra.mxu1 %v1142_v11  ;;  %1054 = vmatprep.subr.bf16.mxu0 %v1178_v25 }
  0x54   :  { %694 = vmatmul.mubr.bf16.vlgmr.msra.gmra.mrb[4].mxu0 %v63_v21 }
  0x55   :  { %735 = vmatmul.mubr.bf16.vlgmr.msra.gmra.mrb[4].mxu1 %v65_v23  ;;  %1055 = vmatpush3.bf16.msra.mxu0 %v1143_v24 }
  0x56   :  { %1056 = vmatprep.subr.bf16.mxu0 %v1178_v25  ;;  %1070 = vmatprep.mubr.msk.bf16.mxu0 %vm1179_vm0, %v1178_v25 }
  0x59   :  { %1057 = vmatpush3.bf16.msra.mxu0 %v1144_v26 }
  0x5a   :  { %1058 = vmatprep.subr.bf16.mxu0 %v1178_v25 }
  0x5d   :  { %1059 = vmatpush3.bf16.msra.mxu0 %v1145_v27 }
  0x5e   :  { %1060 = vmatprep.subr.bf16.mxu0 %v1178_v25 }
  0x61   :  { %1061 = vmatpush3.bf16.msra.mxu0 %v1146_v28 }
  0x62   :  { %1062 = vmatprep.subr.bf16.mxu0 %v1178_v25 }
  0x65   :  { %1063 = vmatpush3.bf16.msra.mxu0 %v1147_v29 }
  0x66   :  { %1064 = vmatprep.subr.bf16.mxu0 %v1178_v25 }
  0x69   :  { %1065 = vmatpush3.bf16.msra.mxu0 %v1148_v30 }
  0x6a   :  { %1066 = vmatprep.subr.bf16.mxu0 %v1178_v25 }
  0x6d   :  { %1067 = vmatpush3.bf16.msra.mxu0 %v1149_v31 }
  0x6e   :  { %1068 = vmatprep.subr.bf16.mxu0 %v1178_v25 }
  0x71   :  { %1069 = vmatpush3.bf16.msra.mxu0 %v1150_v32 }
 0x107   :  { %v973_v33 = vpop.f32.mrb[0].mxu0 }
 0x108   :  { %v995_v34 = vpop.f32.mrb[0].mxu1  ;;  %v974_v35 = vpop.f32.mrb[1].mxu0 }
 0x109   :  { %v975_v36 = vadd.f32 %v974_v35, %v973_v33  ;;  %v996_v37 = vpop.f32.mrb[1].mxu1  ;;  %v976_v38 = vpop.f32.mrb[2].mxu0 }
 0x10a   :  { %v997_v39 = vadd.f32 %v996_v37, %v995_v34  ;;  %v998_v40 = vpop.f32.mrb[2].mxu1  ;;  %v977_v41 = vpop.f32.mrb[3].mxu0 }
 0x10b   :  { %v978_v42 = vadd.f32 %v977_v41, %v976_v38  ;;  %v999_v43 = vpop.f32.mrb[3].mxu1 }
 0x10c   :  { %v655_v44 = vadd.f32 %v997_v39, %v975_v36  ;;  %v1000_v45 = vadd.f32 %v999_v43, %v998_v40 }
 0x10e   :  { %v658_v46 = vadd.f32 %v1000_v45, %v978_v42 }
 0x127   :  { %v1017_v47 = vpop.f32.mrb[4].mxu0 }
 0x128   :  { %v1039_v48 = vpop.f32.mrb[4].mxu1  ;;  %v1018_v49 = vpop.f32.mrb[5].mxu0 }
 0x129   :  { %v1019_v50 = vadd.f32 %v1018_v49, %v1017_v47  ;;  %v1040_v51 = vpop.f32.mrb[5].mxu1  ;;  %v1020_v52 = vpop.f32.mrb[6].mxu0 }
 0x12a   :  { %v1041_v53 = vadd.f32 %v1040_v51, %v1039_v48  ;;  %v1042_v54 = vpop.f32.mrb[6].mxu1  ;;  %v1021_v55 = vpop.f32.mrb[7].mxu0 }
 0x12b   :  { %v696_v56 = vadd.f32 %v1019_v50, %v655_v44  ;;  %v1022_v57 = vadd.f32 %v1021_v55, %v1020_v52  ;;  %v1043_v58 = vpop.f32.mrb[7].mxu1 }
 0x12c   :  { %v1044_v60 = vadd.f32 %v1043_v58, %v1042_v54 }
 0x12d   :  { %v737_v61 = vadd.f32 %v1041_v53, %v696_v56  ;;  %v699_v62 = vadd.f32 %v1022_v57, %v658_v46 }
 0x12f   :  { %v759_v63 = vadd.f32 %v947_v59, %v737_v61  ;;  %v740_v0 = vadd.f32 %v1044_v60, %v699_v62 }
 0x131   :  { %v760_v1 = vadd.f32 %v947_v59, %v740_v0  ;;  %v761_v2 = vmax.f32 %v759_v63, 0.0 }
 0x133   :  { %v762_v3 = vmax.f32 %v760_v1, 0.0 }
 0x135   :  { %v763_v4 = vpack.c.bf16 %v762_v3, %v761_v2 }
 0x137   :  { %1071 = vmatmul.mubr.bf16.vlgmr.msra.gmra.mrb[8].mxu0 %v763_v4 }
 0x20a   :  { %v869_v6 = vpop.f32.mrb[8].mxu0 }
 0x20b   :  { %v870_v7 = vadd.f32 %v948_v5, %v869_v6  ;;  %v1072_v8 = vpop.f32.mrb[9].mxu0 }
 0x20c   :  { %v872_v9 = vpop.f32.mrb[10].mxu0 }
 0x20d   :  { %876 = vst [vmem:[%s1311_s5] sm:$0xff] %v870_v7  ;;  %v873_v10 = vadd.f32 %v948_v5, %v872_v9  ;;  %v1073_v11 = vpop.f32.mrb[11].mxu0 }
 0x20f   :  { %877 = vst [vmem:[%s1311_s5 + $0x8] sm:$0xff] %v873_v10 }
 0x210   :  { %882 = vsyncpa [#allocation4], 1 }

</bundles_post_ra>
